<compile_context>
chip_gen: v5e
topology: v5e:2x2
jax: 0.10.0
libtpu: 0.0.40
codegen_flags: <defaults>
</compile_context>

<pallas_src>
import jax
import jax.numpy as jnp
import numpy as np
from jax import lax
from jax.experimental import pallas as pl
from jax.experimental.pallas import tpu as pltpu


def wrapper_kernel(x_ref, wc_ref, bc_ref, wht_ref, bh_ref, out_ref, pooled_ref):
    # x_ref   : [1, C_in, THW]  f32   one batch element, one spatial tile (HW lane-dense, NCHW kept)
    # wc_ref  : [C_feat, C_in]  bf16  1x1-conv weight (native orientation)
    # bc_ref  : [C_feat, 1]     f32   conv bias (broadcast over the spatial/lane axis)
    # wht_ref : [C_feat, D]     bf16  head weight, host-transposed, 1/HW pooling scale folded in
    # bh_ref  : [1, D]          f32   head bias
    # out_ref : [1, 1, D]       f32   head output row for this batch element (D lane-dense)
    # pooled_ref (scratch): [1, C_feat] f32 running spatial sum for the current batch element
    hw_idx = pl.program_id(1)
    n_hw = pl.num_programs(1)

    @pl.when(hw_idx == 0)
    def _():
        pooled_ref[...] = jnp.zeros_like(pooled_ref)

    # model(x): 1x1 conv == channel matmul on the MXU (M=C_feat, K=C_in, N=THW).
    # Cast the f32 activation tile to bf16 here (no separate XLA cast pass over HBM).
    xb = x_ref[0].astype(jnp.bfloat16)                                   # [C_in, THW]
    y = jnp.dot(wc_ref[...], xb, preferred_element_type=jnp.float32)     # [C_feat, THW] f32 acc
    y = jnp.maximum(y + bc_ref[...], 0.0)                                # bias + ReLU in f32

    # AdaptiveAvgPool2d((1,1)) partial sum for this spatial tile, done on the MXU as an NT
    # matmul (ones[1,THW] · y[C_feat,THW]^T -> [1, C_feat]): keeps the XLU free and yields the
    # row orientation the head matmul wants without any transpose. 1/HW lives in wht_ref.
    ones_row = jnp.ones((1, y.shape[1]), dtype=jnp.bfloat16)
    contrib = lax.dot_general(ones_row, y.astype(jnp.bfloat16),
                              dimension_numbers=(((1,), (1,)), ((), ())),
                              preferred_element_type=jnp.float32)        # [1, C_feat]
    pooled_ref[...] += contrib

    @pl.when(hw_idx == n_hw - 1)
    def _():
        # head(x): Linear as a plain NN matmul, bf16 operands, f32 accumulator + bias.
        p = pooled_ref[...].astype(jnp.bfloat16)                         # [1, C_feat]
        z = jnp.dot(p, wht_ref[...], preferred_element_type=jnp.float32) + bh_ref[...]
        out_ref[0] = z.astype(out_ref.dtype)                             # [1, D], D lane-dense


def _pick_spatial_tile(hw, max_tile=1024):
    """Largest multiple-of-128 divisor of hw that is <= max_tile and yields >= 2 tiles (so the
    x DMA double-buffers and the f32 conv intermediate stays a few MB even at C_feat=2048);
    falls back to the full extent (single tile) when hw has no such divisor."""
    upper = min(max_tile, hw // 2)
    upper -= upper % 128
    for cand in range(upper, 0, -128):
        if hw % cand == 0:
            return cand
    # TODO(synk): ragged HW (not a multiple of 128, e.g. 56*56=3136) currently uses one
    # full-extent spatial tile; a masked tail tile would be needed to keep tiling there.
    return hw


def wrapper_forward(x_nchw, conv_w, conv_b, head_w, head_b):
    """x_nchw: [B, C_in, H, W] (PyTorch layout). Returns [B, D]."""
    B, C_in, H, W = x_nchw.shape
    C_feat = conv_w.shape[0]
    D = head_w.shape[0]
    HW = H * W

    # Free reshape only (no transpose, no dtype-cast HBM pass): NCHW -> [B, C_in, HW] so the
    # spatial axis sits lane-dense and the 1x1 conv is a single channel matmul per tile.
    x_flat = x_nchw.reshape(B, C_in, HW)

    thw = _pick_spatial_tile(HW)
    n_hw = HW // thw

    # Tiny host-side weight prep (one-off, negligible traffic).
    wc = conv_w.reshape(C_feat, C_in).astype(jnp.bfloat16)
    bc = conv_b.reshape(C_feat, 1).astype(jnp.float32)
    # Fold 1/HW into the head weight BEFORE the bf16 cast; transpose once so the in-kernel head
    # matmul is plain NN and the output block is lane-dense along D.
    wht = (head_w.T * (1.0 / HW)).astype(jnp.bfloat16)   # [C_feat, D]
    bh = head_b.reshape(1, D).astype(jnp.float32)

    # Rough per-step VMEM need (double-buffered x tile + weights + f32 conv tile + pooled/out);
    # raise the scoped-VMEM limit only as far as needed, capped below v7x's 64 MiB physical.
    x_blk_bytes = C_in * thw * x_flat.dtype.itemsize
    w_bytes = C_feat * C_in * 2 + C_feat * 4 + C_feat * D * 2 + D * 4
    y_bytes = C_feat * thw * 4
    est = 2 * x_blk_bytes + 2 * w_bytes + 2 * y_bytes + 4 * C_feat * 128
    vmem_limit = int(min(56 * 2**20, max(32 * 2**20, 4 * est)))

    grid_spec = pltpu.PrefetchScalarGridSpec(
        num_scalar_prefetch=0,
        # Batch is "parallel" (one step per element -> both v7x TensorCores busy, no effect on
        # single-TC v5e/v6e); the spatial axis is "arbitrary" and carries the pooled accumulator.
        grid=(B, n_hw),
        in_specs=[
            pl.BlockSpec((1, C_in, thw), lambda b, h: (b, 0, h)),
            pl.BlockSpec((C_feat, C_in), lambda b, h: (0, 0)),
            pl.BlockSpec((C_feat, 1), lambda b, h: (0, 0)),
            pl.BlockSpec((C_feat, D), lambda b, h: (0, 0)),
            pl.BlockSpec((1, D), lambda b, h: (0, 0)),
        ],
        out_specs=pl.BlockSpec((1, 1, D), lambda b, h: (b, 0, 0)),
        scratch_shapes=[pltpu.VMEM((1, C_feat), jnp.float32)],
    )

    out3 = pl.pallas_call(
        wrapper_kernel,
        out_shape=jax.ShapeDtypeStruct((B, 1, D), jnp.float32),
        grid_spec=grid_spec,
        compiler_params=pltpu.CompilerParams(
            dimension_semantics=("parallel", "arbitrary"),
            vmem_limit_bytes=vmem_limit,
        ),
    )(x_flat, wc, bc, wht, bh)

    # Free squeeze of the unit dim; no transpose, no extra data movement.
    return out3.reshape(B, D)


def wrapper_forward_ref(x_nchw, conv_w, conv_b, head_w, head_b):
    """Pure-JAX f32 reference mirroring the PyTorch forward."""
    B, C_in, H, W = x_nchw.shape
    C_feat = conv_w.shape[0]
    y = jnp.einsum("bchw,oc->bohw", x_nchw, conv_w.reshape(C_feat, C_in),
                   precision=jax.lax.Precision.HIGHEST) + conv_b.reshape(1, C_feat, 1, 1)
    y = jnp.maximum(y, 0.0)                                   # model: 1x1 conv + ReLU
    pooled = jnp.mean(y, axis=(2, 3))                         # AdaptiveAvgPool2d((1,1)) + view
    return jnp.dot(pooled, head_w.T,
                   precision=jax.lax.Precision.HIGHEST) + head_b   # head Linear


if __name__ == "__main__":
    # Small deterministic shapes consistent with the module's forward.
    B, C_in, H, W = 2, 4, 16, 16
    C_feat, D = 32, 8

    key = jax.random.PRNGKey(0)
    k_x, k_wc, k_bc, k_wh, k_bh = jax.random.split(key, 5)

    x = jax.random.normal(k_x, (B, C_in, H, W), dtype=jnp.float32)
    conv_w = 0.1 * jax.random.normal(k_wc, (C_feat, C_in, 1, 1), dtype=jnp.float32)
    conv_b = 0.1 * jax.random.normal(k_bc, (C_feat,), dtype=jnp.float32)
    head_w = 0.1 * jax.random.normal(k_wh, (D, C_feat), dtype=jnp.float32)
    head_b = 0.1 * jax.random.normal(k_bh, (D,), dtype=jnp.float32)

    out = wrapper_forward(x, conv_w, conv_b, head_w, head_b)
    out = jax.block_until_ready(out)

    ref = wrapper_forward_ref(x, conv_w, conv_b, head_w, head_b)
    # The kernel uses bf16 MXU operands (activations, conv/head weights, pooling dot), so
    # compare against the full-f32 reference with a tolerance covering bf16 quantization.
    np.testing.assert_allclose(np.asarray(out), np.asarray(ref), rtol=5e-2, atol=5e-3)

    print("KERNEL_OK")
</pallas_src>

<mosaic_0001>
module attributes {stable_mosaic.version = 11 : i64} {
  func.func @wrapper_kernel(%arg0: i32, %arg1: i32, %arg2: memref<1x4x128xf32, #tpu.memory_space<vmem>>, %arg3: memref<32x4xbf16, #tpu.memory_space<vmem>>, %arg4: memref<32x1xf32, #tpu.memory_space<vmem>>, %arg5: memref<32x8xbf16, #tpu.memory_space<vmem>>, %arg6: memref<1x8xf32, #tpu.memory_space<vmem>>, %arg7: memref<1x1x8xf32, #tpu.memory_space<vmem>>, %arg8: memref<1x32xf32, #tpu.memory_space<vmem>>) attributes {dimension_semantics = [#tpu.dimension_semantics<parallel>, #tpu.dimension_semantics<arbitrary>], iteration_bounds = array<i64: 2, 2>, scalar_prefetch = 0 : i64, scratch_operands = 1 : i64, tpu.core_type = #tpu.core_type<tc>, window_params = [{transform_indices = @transform_0, window_bounds = array<i64: 1, 4, 128>}, {pipeline_mode = #tpu.pipeline_mode<synchronous>, transform_indices = @transform_1, window_bounds = array<i64: 32, 4>}, {pipeline_mode = #tpu.pipeline_mode<synchronous>, transform_indices = @transform_2, window_bounds = array<i64: 32, 1>}, {pipeline_mode = #tpu.pipeline_mode<synchronous>, transform_indices = @transform_3, window_bounds = array<i64: 32, 8>}, {pipeline_mode = #tpu.pipeline_mode<synchronous>, transform_indices = @transform_4, window_bounds = array<i64: 1, 8>}, {transform_indices = @transform_5, window_bounds = array<i64: 1, 1, 8>}]} {
    %c0_i32 = arith.constant 0 : i32
    %0 = arith.cmpi eq, %arg1, %c0_i32 : i32
    %1 = arith.extui %0 : i1 to i32
    %c0_i32_0 = arith.constant 0 : i32
    %2 = arith.cmpi ne, %1, %c0_i32_0 : i32
    scf.if %2 {
      %cst_15 = arith.constant 0.000000e+00 : f32
      %22 = vector.broadcast %cst_15 : f32 to vector<1x32xf32>
      %c0_16 = arith.constant 0 : index
      %c0_17 = arith.constant 0 : index
      %23 = vector.load %arg8[%c0_16, %c0_17] : memref<1x32xf32, #tpu.memory_space<vmem>>, vector<1x32xf32>
      tpu.vector_store %arg8[%c0_16, %c0_17], %22 {strides = array<i32>} : memref<1x32xf32, #tpu.memory_space<vmem>>, vector<1x32xf32>,
    } else {
    }
    %c0 = arith.constant 0 : index
    %c0_1 = arith.constant 0 : index
    %c0_2 = arith.constant 0 : index
    %3 = vector.load %arg2[%c0, %c0_1, %c0_2] : memref<1x4x128xf32, #tpu.memory_space<vmem>>, vector<1x4x128xf32>
    %4 = vector.shape_cast %3 : vector<1x4x128xf32> to vector<4x128xf32>
    %5 = arith.truncf %4 : vector<4x128xf32> to vector<4x128xbf16>
    %c0_3 = arith.constant 0 : index
    %c0_4 = arith.constant 0 : index
    %6 = vector.load %arg3[%c0_3, %c0_4] : memref<32x4xbf16, #tpu.memory_space<vmem>>, vector<32x4xbf16>
    %cst = arith.constant dense<0.000000e+00> : vector<32x128xf32>
    %7 = tpu.matmul %6, %5, %cst {dimension_numbers = #tpu.dot_dimension_numbers<[1], [0], [0], [1], [0, 0, 1, 1], [], []>} : vector<32x4xbf16>, vector<4x128xbf16>, vector<32x128xf32> -> vector<32x128xf32>
    %c0_5 = arith.constant 0 : index
    %c0_6 = arith.constant 0 : index
    %8 = vector.load %arg4[%c0_5, %c0_6] : memref<32x1xf32, #tpu.memory_space<vmem>>, vector<32x1xf32>
    %9 = vector.broadcast %8 : vector<32x1xf32> to vector<32x128xf32>
    %10 = arith.addf %7, %9 : vector<32x128xf32>
    %cst_7 = arith.constant 0.000000e+00 : f32
    %11 = vector.broadcast %cst_7 : f32 to vector<32x128xf32>
    %12 = arith.maximumf %10, %11 : vector<32x128xf32>
    %cst_8 = arith.constant 1.000000e+00 : bf16
    %13 = vector.broadcast %cst_8 : bf16 to vector<1x128xbf16>
    %14 = arith.truncf %12 : vector<32x128xf32> to vector<32x128xbf16>
    %cst_9 = arith.constant dense<0.000000e+00> : vector<1x32xf32>
    %15 = tpu.matmul %13, %14, %cst_9 {dimension_numbers = #tpu.dot_dimension_numbers<[1], [1], [0], [0], [0, 0, 1, 0], [], []>} : vector<1x128xbf16>, vector<32x128xbf16>, vector<1x32xf32> -> vector<1x32xf32>
    %c0_10 = arith.constant 0 : index
    %c0_11 = arith.constant 0 : index
    %16 = vector.load %arg8[%c0_10, %c0_11] : memref<1x32xf32, #tpu.memory_space<vmem>>, vector<1x32xf32>
    %17 = arith.addf %16, %15 : vector<1x32xf32>
    %c0_12 = arith.constant 0 : index
    %c0_13 = arith.constant 0 : index
    %18 = vector.load %arg8[%c0_12, %c0_13] : memref<1x32xf32, #tpu.memory_space<vmem>>, vector<1x32xf32>
    tpu.vector_store %arg8[%c0_12, %c0_13], %17 {strides = array<i32>} : memref<1x32xf32, #tpu.memory_space<vmem>>, vector<1x32xf32>,
    %c1_i32 = arith.constant 1 : i32
    %19 = arith.cmpi eq, %arg1, %c1_i32 : i32
    %20 = arith.extui %19 : i1 to i32
    %c0_i32_14 = arith.constant 0 : i32
    %21 = arith.cmpi ne, %20, %c0_i32_14 : i32
    scf.if %21 {
      %c0_15 = arith.constant 0 : index
      %c0_16 = arith.constant 0 : index
      %22 = vector.load %arg8[%c0_15, %c0_16] : memref<1x32xf32, #tpu.memory_space<vmem>>, vector<1x32xf32>
      %23 = arith.truncf %22 : vector<1x32xf32> to vector<1x32xbf16>
      %c0_17 = arith.constant 0 : index
      %c0_18 = arith.constant 0 : index
      %24 = vector.load %arg5[%c0_17, %c0_18] : memref<32x8xbf16, #tpu.memory_space<vmem>>, vector<32x8xbf16>
      %cst_19 = arith.constant dense<0.000000e+00> : vector<1x8xf32>
      %25 = tpu.matmul %23, %24, %cst_19 {dimension_numbers = #tpu.dot_dimension_numbers<[1], [0], [0], [1], [0, 0, 1, 1], [], []>} : vector<1x32xbf16>, vector<32x8xbf16>, vector<1x8xf32> -> vector<1x8xf32>
      %c0_20 = arith.constant 0 : index
      %c0_21 = arith.constant 0 : index
      %26 = vector.load %arg6[%c0_20, %c0_21] : memref<1x8xf32, #tpu.memory_space<vmem>>, vector<1x8xf32>
      %27 = arith.addf %25, %26 : vector<1x8xf32>
      %c0_22 = arith.constant 0 : index
      %c0_23 = arith.constant 0 : index
      %c0_24 = arith.constant 0 : index
      %28 = vector.load %arg7[%c0_22, %c0_23, %c0_24] : memref<1x1x8xf32, #tpu.memory_space<vmem>>, vector<1x1x8xf32>
      %29 = vector.shape_cast %28 : vector<1x1x8xf32> to vector<1x8xf32>
      %30 = vector.shape_cast %27 : vector<1x8xf32> to vector<1x1x8xf32>
      tpu.vector_store %arg7[%c0_22, %c0_23, %c0_24], %30 {strides = array<i32>} : memref<1x1x8xf32, #tpu.memory_space<vmem>>, vector<1x1x8xf32>,
    } else {
    }
    return
  }
  func.func @transform_0(%arg0: i32, %arg1: i32) -> (i32, i32, i32) {
    %c0_i32 = arith.constant 0 : i32
    %c0_i32_0 = arith.constant 0 : i32
    return %arg0, %c0_i32, %arg1 : i32, i32, i32
  }
  func.func @transform_1(%arg0: i32, %arg1: i32) -> (i32, i32) {
    %c0_i32 = arith.constant 0 : i32
    %c0_i32_0 = arith.constant 0 : i32
    %c0_i32_1 = arith.constant 0 : i32
    return %c0_i32, %c0_i32_0 : i32, i32
  }
  func.func @transform_2(%arg0: i32, %arg1: i32) -> (i32, i32) {
    %c0_i32 = arith.constant 0 : i32
    %c0_i32_0 = arith.constant 0 : i32
    %c0_i32_1 = arith.constant 0 : i32
    return %c0_i32, %c0_i32_0 : i32, i32
  }
  func.func @transform_3(%arg0: i32, %arg1: i32) -> (i32, i32) {
    %c0_i32 = arith.constant 0 : i32
    %c0_i32_0 = arith.constant 0 : i32
    %c0_i32_1 = arith.constant 0 : i32
    return %c0_i32, %c0_i32_0 : i32, i32
  }
  func.func @transform_4(%arg0: i32, %arg1: i32) -> (i32, i32) {
    %c0_i32 = arith.constant 0 : i32
    %c0_i32_0 = arith.constant 0 : i32
    %c0_i32_1 = arith.constant 0 : i32
    return %c0_i32, %c0_i32_0 : i32, i32
  }
  func.func @transform_5(%arg0: i32, %arg1: i32) -> (i32, i32, i32) {
    %c0_i32 = arith.constant 0 : i32
    %c0_i32_0 = arith.constant 0 : i32
    %c0_i32_1 = arith.constant 0 : i32
    return %arg0, %c0_i32, %c0_i32_0 : i32, i32, i32
  }
}

</mosaic_0001>

<bundles_post_ra>
// kernel: tpu_custom_call.1
= control target key start
LH: loop header
LB: loop body
LE: loop exit
PB: predicated region body
PF: predicated region fallthrough
CT: control target
= control target key end

     0   :  { %10 = vsyncpa [#allocation4], 0  ;;  %s869_s0 = inlined_call_operand.vmem [shape: f32[2,4,256], index: 0, kind: input, shape index: {}]   ;;  %s870_s1 = inlined_call_operand.vmem [shape: bf16[32,4], index: 1, kind: input, shape index: {}]   ;;  %s871_s2 = inlined_call_operand.vmem [shape: f32[32,1], index: 2, kind: input, shape index: {}]   ;;  %s872_s3 = inlined_call_operand.vmem [shape: bf16[32,8], index: 3, kind: input, shape index: {}]   ;;  %s873_s4 = inlined_call_operand.vmem [shape: f32[1,8], index: 4, kind: input, shape index: {}]   ;;  %s874_s5 = inlined_call_operand.hbm [shape: f32[2,1,8], index: 5, kind: output, shape index: {}]  }
   0x1   :  { %12 = vsyncpa [#allocation4 + $0x1], 0  ;;  %s713_s18 = smov 0   ;;  %s715_s19 = smov 0  }
   0x2   :  { %s717_s20 = smov 0   ;;  %s719_s21 = smov 0  }
   0x3   :  { %s721_s22 = smov 0   ;;  %s723_s23 = smov 0  }
   0x4   :  { %s725_s24 = smov 0   ;;  %s727_s25 = smov 0  }
   0x5 LB: > { %s473_s26 = sadd.s32 4294967295, %s678_s25   ;;  %s474_s27 = sadd.s32 4294967294, %s678_s25   ;;  %s678_s25 = sphi %s727_s25, %s18_s25   ;;  %s674_s24 = sphi %s725_s24, %s883_s24   ;;  %s670_s23 = sphi %s723_s23, %s882_s23   ;;  %s666_s22 = sphi %s721_s22, %s881_s22   ;;  %s662_s21 = sphi %s719_s21, %s880_s21   ;;  %s658_s20 = sphi %s717_s20, %s879_s20   ;;  %s654_s19 = sphi %s715_s19, %s878_s19   ;;  %s650_s18 = sphi %s713_s18, %s877_s18  }
   0x6   : > { %s27_s28 = sadd.s32 1, %s670_s23  ;;  %s30_s29 = sadd.s32 1, %s674_s24 }
   0x7   : > { %p28_p0 = scmp.ge.s32.totalorder %s27_s28, 2  ;;  %p159_p1 = scmp.ne.s32.totalorder %s658_s20, %s654_s19 }
   0x8   : > { %p160_p2 = scmp.eq.s32.totalorder %s473_s26, 3  ;;  %p165_p4 = scmp.ne.s32.totalorder %s654_s19, %s650_s18 }
   0x9   : > { %s885_s28 = smov (%p28_p0, %s27_s28), 0  ;;  %s887_s29 = smov (!%p28_p0, %s30_s29), %s674_s24 }
   0xa   : > { %p762_p3 = por %p160_p2, %p159_p1  ;;  %p32_p5 = scmp.ge.s32.totalorder %s887_s29, 2 }
   0xb   : > { %p166_p6 = scmp.eq.s32.totalorder %s474_s27, 3  ;;  %p477_p7 = scmp.ge.s32.totalorder %s678_s25, 1 }
   0xc   : > { %p207_p8 = scmp.lt.s32.totalorder %s678_s25, 5  ;;  %s889_s29 = smov (%p32_p5, %s887_s29), 0 }
   0xd   : > { %p772_p9 = por %p166_p6, %p165_p4  ;;  %s146_s7 = ssub.s32 %s674_s24, %s889_s29 }
   0xe   : > { %p208_p10 = pnand %p477_p7, %p207_p8  ;;  %s149_s8 = sadd.s32 1, %s658_s20 }
   0xf   : > { %p147_p11 = scmp.eq.s32.totalorder %s146_s7, 0  ;;  %s235_s10 = sand.u32 (!%p208_p10), 1, %s654_s19  }
  0x10   : > { %211 = sbr.rel (%p208_p10) target bundleno = 488 (0x1e8), region = 40  ;;  %p237_p12 = scmp.lt.s32.totalorder (!%p208_p10), %s666_s22, 1 }
  0x11   : > { %s780_s9 = scalar_select %p147_p11, %s658_s20, %s149_s8  }
  0x12   : > { %p239_p13 = scmp.lt.s32.totalorder (!%p208_p10), %s662_s21, 1  ;;  %s792_s27 = scalar_lea.vmem (!%p208_p10), [#allocation3], %s235_s10 }
  0x13   : > { %p480_p0 = scmp.ne.s32.totalorder (!%p208_p10), %s662_s21, 0 }
  0x15   : > { %s238_s11 = scalar_select %p237_p12, %s666_s22, 1 }
  0x16   : > { %s240_s12 = scalar_select %p239_p13, %s662_s21, 1 }
  0x17   : > { %s478_s13 = sshll.u32 %s238_s11, 1  ;;  %250 = sbr.rel (%p480_p0) target bundleno = 30 (0x1e), region = 44 }
  0x18   : > { %s242_s14 = sadd.s32 %s478_s13, %s240_s12 }
  0x19   : > { %s479_s15 = sshll.u32 %s242_s14, 2 }
  0x1a   : > { %s244_s26 = scalar_lea.vmem %s869_s0, %s479_s15 }
  0x1c   : > { %vm251_vm0 = vcmask 253952   ;;  %v680_v0 = vmov 0.0  }
  0x1d   : > { %252 = vst.msk [vmem:[#allocation2] sm:$0x1] %vm251_vm0, %v680_v0 }
  0x1e PF: > { %v253_v1 = vld [vmem:[%s244_s26] sm:$0xf]  ;;  %vm300_vm1 = vcmask 1041408   ;;  %v261_v3 = vld [vmem:[%s871_s2 + $0x10] sm:$0xff]  ;;  %v681_v5 = vmov 0   ;;  %v504_v7 = vld [vmem:[%s870_s1 + $0x8] sm:$0xff] }
  0x1f   : > { %v254_v2 = vpack.c.bf16 %v253_v1, %v253_v1  ;;  %v259_v4 = vld [vmem:[%s871_s2] sm:$0xff]  ;;  %582 = vset.pattern.permute.xlu0 %v681_v5  ;;  %583 = vset.pattern.permute.xlu1 %v681_v5  ;;  %vm293_vm2 = vcmask 31744   ;;  %v262_v9 = vld [vmem:[%s871_s2 + $0x18] sm:$0xff]  ;;  %v260_v10 = vld [vmem:[%s871_s2 + $0x8] sm:$0xff]  ;;  %v682_v29 = vmov 1065369472  }
  0x20   : > { %v503_v8 = vld [vmem:[%s870_s1] sm:$0xff]  ;;  %275 = vperm.xlu0 %582, %v261_v3   ;;  %265 = vperm.xlu1 %583, %v259_v4   ;;  %vm344_vm3 = vcmask 253952   ;;  %p491_p1 = scmp.ne.s32.totalorder %s662_s21, 1 }
  0x21   : > { %v302_v6 = vsel %vm300_vm1, %v254_v2, 0 }
  0x22   : > { %507 = vmatpush.bf16.msra.mxu2 %v302_v6  ;;  %311 = vmatpush.bf16.msra.mxu0 %v302_v6 }
  0x24   : > { %v342_v30 = vld [vmem:[#allocation2] sm:$0x1] }
  0x25   : > { %490 = vmatmul.msk.bf16.vlgmr.msra.gmra.mxu2 %vm293_vm2, %v504_v7  ;;  %489 = vmatmul.msk.bf16.vlgmr.msra.gmra.mxu0 %vm293_vm2, %v503_v8 }
  0x28   : > { %280 = vperm.xlu0 %582, %v262_v9   ;;  %270 = vperm.xlu1 %583, %v260_v10  }
  0x92   : > { %v276_v11 = vpop.permute.xlu0 %275  ;;  %v266_v12 = vpop.permute.xlu1 %265 }
  0x9a   : > { %v281_v16 = vpop.permute.xlu0 %280  ;;  %v271_v19 = vpop.permute.xlu1 %270 }
  0xa2   : > { %v313_v13 = vpop.f32.mrf.mxu0 }
  0xa3   : > { %v314_v23 = vadd.f32 %v313_v13, %v266_v12 }
  0xa5   : > { %v323_v26 = vmax.f32 %v314_v23, 0.0 }
  0xa8   : > { %v318_v14 = vpop.f32.mrf.mxu2 }
  0xa9   : > { %v319_v15 = vadd.f32 %v318_v14, %v276_v11 }
  0xaa   : > { %v315_v20 = vpop.f32.mrf.mxu0 }
  0xab   : > { %v325_v21 = vmax.f32 %v319_v15, 0.0  ;;  %v316_v24 = vadd.f32 %v315_v20, %v271_v19 }
  0xad   : > { %v324_v27 = vmax.f32 %v316_v24, 0.0 }
  0xaf   : > { %v327_v28 = vpack.c.bf16 %v324_v27, %v323_v26 }
  0xb0   : > { %v320_v17 = vpop.f32.mrf.mxu2 }
  0xb1   : > { %v321_v18 = vadd.f32 %v320_v17, %v281_v16 }
  0xb3   : > { %v326_v22 = vmax.f32 %v321_v18, 0.0 }
  0xb5   : > { %v328_v25 = vpack.c.bf16 %v326_v22, %v325_v21 }
  0xb7   : > { %335 = vmatpush.bf16.xpose.msra.mxu1 %v328_v25 }
  0xbf   : > { %336 = vmatpush.bf16.xpose.msra.mxu1 %v327_v28 }
  0xc6   : > { %337 = vmatmul.bf16.vlgmr.msra.gmra.mxu1 %v682_v29 }
 0x143   : > { %v338_v31 = vpop.f32.mrf.mxu1 }
 0x144   : > { %v343_v32 = vadd.f32 %v342_v30, %v338_v31 }
 0x146   : > { %345 = vst.msk [vmem:[#allocation2] sm:$0x1] %vm344_vm3, %v343_v32 }
 0x147   : > { %349 = sbr.rel (%p491_p1) target bundleno = 474 (0x1da), region = 48 }
 0x14b   : > { %v340_v33 = vpop.f32.mrf.mxu1 }
 0x14c   : > { %v506_v34 = vld [vmem:[%s872_s3 + $0x8] sm:$0xff]  ;;  %v505_v35 = vld [vmem:[%s872_s3] sm:$0xff]  ;;  %vm369_vm4 = vcmask 261120   ;;  %vm386_vm5 = vcmask 57344  }
 0x14d   : > { %379 = vmatpush.bf16.msra.mxu0 %v506_v34  ;;  %v350_v36 = vld [vmem:[#allocation2] sm:$0x1] }
 0x14e   : > { %v351_v37 = vpack.c.bf16 %v350_v36, %v350_v36  ;;  %v356_v38 = vld [vmem:[%s873_s4] sm:$0x1] }
 0x151   : > { %380 = vmatpush.bf16.msra.mxu0 %v505_v35 }
 0x154   : > { %500 = vmatmul.msk.bf16.vlgmr.msra.gmra.mxu0 %vm369_vm4, %v351_v37 }
 0x1d1   : > { %v382_v39 = vpop.f32.mrf.mxu0 }
 0x1d2   : > { %v383_v40 = vadd.f32 %v382_v39, %v356_v38 }
 0x1d4   : > { %387 = vst.msk [vmem:[%s792_s27] sm:$0x1] %vm386_vm5, %v383_v40 }
 0x1d9   : > { %v384_v41 = vpop.f32.mrf.mxu0 }
 0x1da PF: > { %s397_s26 = scalar_lea.hbm %s874_s5, %s666_s22  ;;  %s399_s7 = sshll.u32 %s792_s27, 4  ;;  %s400_s7 = int_to_ptr.vmem [resolvable:$true] %s399_s7 }
 0x1db   : > { %s401_s8 = sshll.u32 %s397_s26, 4  ;;  %s389_s11 = scalar_lea.sflag [#allocation4], %s235_s10  ;;  %s402_s8 = int_to_ptr.hbm [resolvable:$true] %s401_s8 }
 0x1dc   : > { %s598_s12 = sshra.s32 %s402_s8, 4  ;;  %s604_s16 = scalar_lea.hbm %s874_s5, 2  ;;  %s599_s12 = int_to_ptr.hbm [resolvable:$true] %s598_s12 }
 0x1dd   : > { %s600_s13 = scalar_lea.hbm %s599_s12, 1  ;;  %p605_p6 = scmp.lt.s32.totalorder %s599_s12, %s874_s5 }
 0x1de   : > { %p601_p2 = scmp.ne.s32.totalorder %s599_s12, %s600_s13  ;;  %p606_p7 = scmp.lt.s32.totalorder %s604_s16, %s600_s13 }
 0x1e0   : > { %p602_p4 = pnand %p601_p2, %p762_p3  ;;  %p607_p8 = por %p606_p7, %p605_p6 }
 0x1e2   : > { %p603_p5 = pneg %p602_p4 }
 0x1e4   : > { %p608_p10 = pnand %p607_p8, %p603_p5 }
 0x1e6   : > { %611 = shalt.err (!%p608_p10)
}
 0x1e7   : > { %508 = dma.vmem_to_hbm [thread:$0]  (%p762_p3), %s400_s7, 16, %s402_s8, %s389_s11  }
 0x1e8 PF: > { %p514_p11 = scmp.ge.s32.totalorder %s678_s25, 2  ;;  %s413_s22 = sand.u32 1, %s650_s18  }
 0x1e9   : > { %s414_s10 = scalar_lea.sflag [#allocation4], %s413_s22 }
 0x1ea   : > { %p511_p12 = pnand %p514_p11, %p772_p9 }
 0x1ec   : > { %p512_p13 = pneg %p511_p12 }
 0x1ee   : > { %645 = dma.done.wait (%p512_p13), %s414_s10, 16  }
 0x1ef   : > { %647 = vsyncadd (%p512_p13), %s414_s10, 4294967280  ;;  %s18_s25 = sadd.s32 1, %s678_s25   ;;  %s877_s18 = smov %s654_s19 }
 0x1f0   : > { %p15_p0 = scmp.ge.s32.totalorder %s18_s25, 6   ;;  %s878_s19 = smov %s658_s20 }
 0x1f1   : > { %s879_s20 = smov %s780_s9  ;;  %s880_s21 = smov %s670_s23 }
 0x1f2   : > { %s881_s22 = smov %s674_s24  ;;  %s882_s23 = smov %s885_s28 }
 0x1f3   : > { %s883_s24 = smov %s889_s29  ;;  %17 = sbr.rel (!%p15_p0) target bundleno = 5 (0x5), region = 83 }
 0x1f8   :  { %419 = vsyncpa [#allocation4], 1 }
 0x1f9   :  { %421 = vsyncpa [#allocation4 + $0x1], 1 }

</bundles_post_ra>
